<compile_context>
chip_gen: v7x
topology: tpu7x:2x2x1
jax: 0.10.0
libtpu: 0.0.40
codegen_flags: <defaults>
</compile_context>

<pallas_src>
import functools

import jax
import jax.numpy as jnp
from jax import lax
from jax.experimental import pallas as pl
from jax.experimental.pallas import tpu as pltpu


# ---------------------------------------------------------------------------
# Pass 1: per-batch global sum / sum-of-squares -> mean, rstd
# ---------------------------------------------------------------------------
def _stats_kernel(x_ref, mean_ref, rstd_ref, *, inv_n: float, eps: float):
    t = pl.program_id(1)

    @pl.when(t == 0)
    def _():
        mean_ref[...] = jnp.zeros_like(mean_ref)   # accumulates sum(x)
        rstd_ref[...] = jnp.zeros_like(rstd_ref)   # accumulates sum(x*x)

    xf = x_ref[...].astype(jnp.float32)            # (1, C, tT)
    # Lane (XLU) reduce first, then sublane reduce to a scalar block.
    s1 = jnp.sum(xf, axis=2, keepdims=True)        # (1, C, 1)
    s2 = jnp.sum(xf * xf, axis=2, keepdims=True)   # (1, C, 1)
    mean_ref[...] += jnp.sum(s1, axis=1, keepdims=True)   # (1, 1, 1)
    rstd_ref[...] += jnp.sum(s2, axis=1, keepdims=True)

    @pl.when(t == pl.num_programs(1) - 1)
    def _():
        m = mean_ref[...] * inv_n
        ex2 = rstd_ref[...] * inv_n
        var = jnp.maximum(ex2 - m * m, 0.0)        # guard tiny negative cancellation
        mean_ref[...] = m
        rstd_ref[...] = lax.rsqrt(var + eps)


# ---------------------------------------------------------------------------
# Pass 2: out = gamma * (x - mean) * rstd + beta  ==  x * scale + shift
# ---------------------------------------------------------------------------
def _norm_kernel(x_ref, mean_ref, rstd_ref, g_ref, b_ref, o_ref):
    # Fold stats + affine into per-channel scale/shift (O(C) work per tile,
    # negligible vs the O(C*tT) element stream).
    rstd = rstd_ref[...]                           # (1, 1, 1)
    mean = mean_ref[...]                           # (1, 1, 1)
    scale = g_ref[...] * rstd                      # (1, C, 1)
    shift = b_ref[...] - mean * scale              # (1, C, 1)
    xf = x_ref[...].astype(jnp.float32)            # (1, C, tT)
    o_ref[...] = (xf * scale + shift).astype(o_ref.dtype)


def _choose_t_tile(C: int, T: int, itemsize: int, target_bytes: int = 4 << 20) -> int:
    """Largest lane-dense (multiple of 128) divisor of T whose block is <= target."""
    if T % 128 != 0 or C * T * itemsize <= target_bytes:
        return T
    for m in range(T // 128, 0, -1):
        tile = 128 * m
        if T % tile == 0 and C * tile * itemsize <= target_bytes:
            return tile
    return 128  # smallest lane-dense divisor (T % 128 == 0 guaranteed here)


def global_channel_layer_norm(x: jax.Array,
                              gamma: jax.Array | None = None,
                              beta: jax.Array | None = None,
                              eps: float = 1e-5,
                              t_tile: int | None = None) -> jax.Array:
    """Pallas implementation of GlobalChannelLayerNorm.forward for x: (N, C, T)."""
    if x.ndim != 3:
        raise RuntimeError("GlobalChannelLayerNorm accepts a 3D tensor (N, C, T)")
    B, C, T = x.shape

    # elementwise_affine=False <=> gamma=ones, beta=zeros
    if gamma is None:
        gamma = jnp.ones((C, 1), jnp.float32)
    if beta is None:
        beta = jnp.zeros((C, 1), jnp.float32)
    g = gamma.reshape(1, C, 1).astype(jnp.float32)
    b = beta.reshape(1, C, 1).astype(jnp.float32)

    tT = t_tile if t_tile is not None else _choose_t_tile(C, T, x.dtype.itemsize)
    assert T % tT == 0, "t_tile must divide T"
    n_t = T // tT
    inv_n = 1.0 / float(C * T)

    vmem_limit = 32 * 1024 * 1024  # safe on v5e/v6e/v7x; blocks are <= ~4 MiB

    # ---- Pass 1: stats (T axis is the reduction axis, kept innermost) ----
    mean, rstd = pl.pallas_call(
        functools.partial(_stats_kernel, inv_n=inv_n, eps=float(eps)),
        out_shape=(
            jax.ShapeDtypeStruct((B, 1, 1), jnp.float32),
            jax.ShapeDtypeStruct((B, 1, 1), jnp.float32),
        ),
        grid_spec=pltpu.PrefetchScalarGridSpec(
            num_scalar_prefetch=0,
            grid=(B, n_t),
            in_specs=[pl.BlockSpec((1, C, tT), lambda bi, ti: (bi, 0, ti))],
            out_specs=[
                pl.BlockSpec((1, 1, 1), lambda bi, ti: (bi, 0, 0)),
                pl.BlockSpec((1, 1, 1), lambda bi, ti: (bi, 0, 0)),
            ],
        ),
        compiler_params=pltpu.CompilerParams(
            dimension_semantics=("parallel", "arbitrary"),
            vmem_limit_bytes=vmem_limit,
        ),
    )(x)

    # ---- Pass 2: normalize + affine (fully parallel, streaming) ----
    out = pl.pallas_call(
        _norm_kernel,
        out_shape=jax.ShapeDtypeStruct((B, C, T), x.dtype),
        grid_spec=pltpu.PrefetchScalarGridSpec(
            num_scalar_prefetch=0,
            grid=(B, n_t),
            in_specs=[
                pl.BlockSpec((1, C, tT), lambda bi, ti: (bi, 0, ti)),
                pl.BlockSpec((1, 1, 1), lambda bi, ti: (bi, 0, 0)),
                pl.BlockSpec((1, 1, 1), lambda bi, ti: (bi, 0, 0)),
                pl.BlockSpec((1, C, 1), lambda bi, ti: (0, 0, 0)),
                pl.BlockSpec((1, C, 1), lambda bi, ti: (0, 0, 0)),
            ],
            out_specs=pl.BlockSpec((1, C, tT), lambda bi, ti: (bi, 0, ti)),
        ),
        compiler_params=pltpu.CompilerParams(
            dimension_semantics=("parallel", "parallel"),
            vmem_limit_bytes=vmem_limit,
        ),
    )(x, mean, rstd, g, b)

    return out


def gcln_ref(x, gamma, beta, eps):
    """Pure-JAX reference mirroring the PyTorch forward exactly."""
    mean = jnp.mean(x, axis=(1, 2), keepdims=True)
    var = jnp.mean((x - mean) ** 2, axis=(1, 2), keepdims=True)
    return gamma[None, :, :] * (x - mean) / jnp.sqrt(var + eps) + beta[None, :, :]


if __name__ == "__main__":
    eps = 1e-5
    key = jax.random.PRNGKey(0)
    k1, k2, k3, k4 = jax.random.split(key, 4)

    # Small shape consistent with the module's (N, C, T) input.
    B, C, T = 2, 8, 256
    x = jax.random.normal(k1, (B, C, T), dtype=jnp.float32)
    gamma = 1.0 + 0.1 * jax.random.normal(k2, (C, 1), dtype=jnp.float32)
    beta = 0.1 * jax.random.normal(k3, (C, 1), dtype=jnp.float32)

    out = global_channel_layer_norm(x, gamma, beta, eps)
    out = jax.block_until_ready(out)
    ref = gcln_ref(x, gamma, beta, eps)
    assert out.shape == ref.shape and out.dtype == ref.dtype
    assert jnp.allclose(out, ref, atol=1e-4, rtol=1e-4), (
        "Pallas GlobalChannelLayerNorm mismatch vs reference; "
        f"max abs err = {float(jnp.max(jnp.abs(out - ref)))}"
    )

    # Extra check exercising the multi-tile accumulation path (n_t > 1).
    T2 = 1024
    x2 = jax.random.normal(k4, (B, C, T2), dtype=jnp.float32)
    out2 = jax.block_until_ready(
        global_channel_layer_norm(x2, gamma, beta, eps, t_tile=128))
    ref2 = gcln_ref(x2, gamma, beta, eps)
    assert jnp.allclose(out2, ref2, atol=1e-4, rtol=1e-4), (
        "Pallas GlobalChannelLayerNorm (tiled) mismatch vs reference; "
        f"max abs err = {float(jnp.max(jnp.abs(out2 - ref2)))}"
    )

    print("KERNEL_OK")
</pallas_src>

<mosaic_0001>
module attributes {stable_mosaic.version = 11 : i64} {
  func.func @_stats_kernel(%arg0: i32, %arg1: i32, %arg2: memref<1x8x256xf32, #tpu.memory_space<vmem>>, %arg3: memref<1x1x1xf32, #tpu.memory_space<vmem>>, %arg4: memref<1x1x1xf32, #tpu.memory_space<vmem>>) attributes {dimension_semantics = [#tpu.dimension_semantics<parallel>, #tpu.dimension_semantics<arbitrary>], iteration_bounds = array<i64: 2, 1>, scalar_prefetch = 0 : i64, scratch_operands = 0 : i64, tpu.core_type = #tpu.core_type<tc>, window_params = [{transform_indices = @transform_0, window_bounds = array<i64: 1, 8, 256>}, {transform_indices = @transform_1, window_bounds = array<i64: 1, 1, 1>}, {transform_indices = @transform_2, window_bounds = array<i64: 1, 1, 1>}]} {
    %c0_i32 = arith.constant 0 : i32
    %0 = arith.cmpi eq, %arg1, %c0_i32 : i32
    %1 = arith.extui %0 : i1 to i32
    %c0_i32_0 = arith.constant 0 : i32
    %2 = arith.cmpi ne, %1, %c0_i32_0 : i32
    scf.if %2 {
      %cst_20 = arith.constant 0.000000e+00 : f32
      %22 = vector.broadcast %cst_20 : f32 to vector<1x1x1xf32>
      %c0_21 = arith.constant 0 : index
      %c0_22 = arith.constant 0 : index
      %c0_23 = arith.constant 0 : index
      %23 = vector.load %arg3[%c0_21, %c0_22, %c0_23] : memref<1x1x1xf32, #tpu.memory_space<vmem>>, vector<1x1x1xf32>
      tpu.vector_store %arg3[%c0_21, %c0_22, %c0_23], %22 {strides = array<i32>} : memref<1x1x1xf32, #tpu.memory_space<vmem>>, vector<1x1x1xf32>,
      %cst_24 = arith.constant 0.000000e+00 : f32
      %24 = vector.broadcast %cst_24 : f32 to vector<1x1x1xf32>
      %c0_25 = arith.constant 0 : index
      %c0_26 = arith.constant 0 : index
      %c0_27 = arith.constant 0 : index
      %25 = vector.load %arg4[%c0_25, %c0_26, %c0_27] : memref<1x1x1xf32, #tpu.memory_space<vmem>>, vector<1x1x1xf32>
      tpu.vector_store %arg4[%c0_25, %c0_26, %c0_27], %24 {strides = array<i32>} : memref<1x1x1xf32, #tpu.memory_space<vmem>>, vector<1x1x1xf32>,
    } else {
    }
    %c0 = arith.constant 0 : index
    %c0_1 = arith.constant 0 : index
    %c0_2 = arith.constant 0 : index
    %3 = vector.load %arg2[%c0, %c0_1, %c0_2] : memref<1x8x256xf32, #tpu.memory_space<vmem>>, vector<1x8x256xf32>
    %cst = arith.constant dense<0.000000e+00> : vector<1x8xf32>
    %4 = vector.multi_reduction <add>, %3, %cst [2] : vector<1x8x256xf32> to vector<1x8xf32>
    %5 = vector.shape_cast %4 : vector<1x8xf32> to vector<1x8x1xf32>
    %6 = arith.mulf %3, %3 : vector<1x8x256xf32>
    %cst_3 = arith.constant dense<0.000000e+00> : vector<1x8xf32>
    %7 = vector.multi_reduction <add>, %6, %cst_3 [2] : vector<1x8x256xf32> to vector<1x8xf32>
    %8 = vector.shape_cast %7 : vector<1x8xf32> to vector<1x8x1xf32>
    %c0_4 = arith.constant 0 : index
    %c0_5 = arith.constant 0 : index
    %c0_6 = arith.constant 0 : index
    %9 = vector.load %arg3[%c0_4, %c0_5, %c0_6] : memref<1x1x1xf32, #tpu.memory_space<vmem>>, vector<1x1x1xf32>
    %cst_7 = arith.constant dense<0.000000e+00> : vector<1x1xf32>
    %10 = vector.multi_reduction <add>, %5, %cst_7 [1] : vector<1x8x1xf32> to vector<1x1xf32>
    %11 = vector.shape_cast %10 : vector<1x1xf32> to vector<1x1x1xf32>
    %12 = arith.addf %9, %11 : vector<1x1x1xf32>
    %c0_8 = arith.constant 0 : index
    %c0_9 = arith.constant 0 : index
    %c0_10 = arith.constant 0 : index
    %13 = vector.load %arg3[%c0_8, %c0_9, %c0_10] : memref<1x1x1xf32, #tpu.memory_space<vmem>>, vector<1x1x1xf32>
    tpu.vector_store %arg3[%c0_8, %c0_9, %c0_10], %12 {strides = array<i32>} : memref<1x1x1xf32, #tpu.memory_space<vmem>>, vector<1x1x1xf32>,
    %c0_11 = arith.constant 0 : index
    %c0_12 = arith.constant 0 : index
    %c0_13 = arith.constant 0 : index
    %14 = vector.load %arg4[%c0_11, %c0_12, %c0_13] : memref<1x1x1xf32, #tpu.memory_space<vmem>>, vector<1x1x1xf32>
    %cst_14 = arith.constant dense<0.000000e+00> : vector<1x1xf32>
    %15 = vector.multi_reduction <add>, %8, %cst_14 [1] : vector<1x8x1xf32> to vector<1x1xf32>
    %16 = vector.shape_cast %15 : vector<1x1xf32> to vector<1x1x1xf32>
    %17 = arith.addf %14, %16 : vector<1x1x1xf32>
    %c0_15 = arith.constant 0 : index
    %c0_16 = arith.constant 0 : index
    %c0_17 = arith.constant 0 : index
    %18 = vector.load %arg4[%c0_15, %c0_16, %c0_17] : memref<1x1x1xf32, #tpu.memory_space<vmem>>, vector<1x1x1xf32>
    tpu.vector_store %arg4[%c0_15, %c0_16, %c0_17], %17 {strides = array<i32>} : memref<1x1x1xf32, #tpu.memory_space<vmem>>, vector<1x1x1xf32>,
    %c0_i32_18 = arith.constant 0 : i32
    %19 = arith.cmpi eq, %arg1, %c0_i32_18 : i32
    %20 = arith.extui %19 : i1 to i32
    %c0_i32_19 = arith.constant 0 : i32
    %21 = arith.cmpi ne, %20, %c0_i32_19 : i32
    scf.if %21 {
      %c0_20 = arith.constant 0 : index
      %c0_21 = arith.constant 0 : index
      %c0_22 = arith.constant 0 : index
      %22 = vector.load %arg3[%c0_20, %c0_21, %c0_22] : memref<1x1x1xf32, #tpu.memory_space<vmem>>, vector<1x1x1xf32>
      %cst_23 = arith.constant 4.8828125E-4 : f32
      %23 = vector.broadcast %cst_23 : f32 to vector<1x1x1xf32>
      %24 = arith.mulf %22, %23 : vector<1x1x1xf32>
      %c0_24 = arith.constant 0 : index
      %c0_25 = arith.constant 0 : index
      %c0_26 = arith.constant 0 : index
      %25 = vector.load %arg4[%c0_24, %c0_25, %c0_26] : memref<1x1x1xf32, #tpu.memory_space<vmem>>, vector<1x1x1xf32>
      %cst_27 = arith.constant 4.8828125E-4 : f32
      %26 = vector.broadcast %cst_27 : f32 to vector<1x1x1xf32>
      %27 = arith.mulf %25, %26 : vector<1x1x1xf32>
      %28 = arith.mulf %24, %24 : vector<1x1x1xf32>
      %29 = arith.subf %27, %28 : vector<1x1x1xf32>
      %cst_28 = arith.constant 0.000000e+00 : f32
      %30 = vector.broadcast %cst_28 : f32 to vector<1x1x1xf32>
      %31 = arith.maximumf %29, %30 : vector<1x1x1xf32>
      %c0_29 = arith.constant 0 : index
      %c0_30 = arith.constant 0 : index
      %c0_31 = arith.constant 0 : index
      %32 = vector.load %arg3[%c0_29, %c0_30, %c0_31] : memref<1x1x1xf32, #tpu.memory_space<vmem>>, vector<1x1x1xf32>
      tpu.vector_store %arg3[%c0_29, %c0_30, %c0_31], %24 {strides = array<i32>} : memref<1x1x1xf32, #tpu.memory_space<vmem>>, vector<1x1x1xf32>,
      %cst_32 = arith.constant 9.99999974E-6 : f32
      %33 = vector.broadcast %cst_32 : f32 to vector<1x1x1xf32>
      %34 = arith.addf %31, %33 : vector<1x1x1xf32>
      %35 = math.rsqrt %34 : vector<1x1x1xf32>
      %c0_33 = arith.constant 0 : index
      %c0_34 = arith.constant 0 : index
      %c0_35 = arith.constant 0 : index
      %36 = vector.load %arg4[%c0_33, %c0_34, %c0_35] : memref<1x1x1xf32, #tpu.memory_space<vmem>>, vector<1x1x1xf32>
      tpu.vector_store %arg4[%c0_33, %c0_34, %c0_35], %35 {strides = array<i32>} : memref<1x1x1xf32, #tpu.memory_space<vmem>>, vector<1x1x1xf32>,
    } else {
    }
    return
  }
  func.func @transform_0(%arg0: i32, %arg1: i32) -> (i32, i32, i32) {
    %c0_i32 = arith.constant 0 : i32
    %c0_i32_0 = arith.constant 0 : i32
    return %arg0, %c0_i32, %arg1 : i32, i32, i32
  }
  func.func @transform_1(%arg0: i32, %arg1: i32) -> (i32, i32, i32) {
    %c0_i32 = arith.constant 0 : i32
    %c0_i32_0 = arith.constant 0 : i32
    %c0_i32_1 = arith.constant 0 : i32
    return %arg0, %c0_i32, %c0_i32_0 : i32, i32, i32
  }
  func.func @transform_2(%arg0: i32, %arg1: i32) -> (i32, i32, i32) {
    %c0_i32 = arith.constant 0 : i32
    %c0_i32_0 = arith.constant 0 : i32
    %c0_i32_1 = arith.constant 0 : i32
    return %arg0, %c0_i32, %c0_i32_0 : i32, i32, i32
  }
}

</mosaic_0001>

<bundles_post_ra>
// kernel: tpu_custom_call.1
= control target key start
LH: loop header
LB: loop body
LE: loop exit
PB: predicated region body
PF: predicated region fallthrough
CT: control target
= control target key end

     0   :  { %8 = vsyncpa [#allocation3], 0  ;;  %s646_s0 = inlined_call_operand.hbm [shape: f32[2,8,256], index: 0, kind: input, shape index: {}]   ;;  %s647_s1 = inlined_call_operand.vmem [shape: f32[2,1,1], index: 1, kind: output, shape index: {0}]   ;;  %s648_s2 = inlined_call_operand.vmem [shape: f32[2,1,1], index: 2, kind: output, shape index: {1}]  }
   0x1   :  { %10 = vsyncpa [#allocation3 + $0x1], 0  ;;  %s498_s9 = smov 0   ;;  %s500_s10 = smov 0  }
   0x2   :  { %s502_s11 = smov 0   ;;  %s504_s12 = smov 0  }
   0x3   :  { %s506_s13 = smov 0   ;;  %s508_s14 = smov 0  }
   0x4 LB: > { %s329_s15 = sadd.s32 4294967295, %s479_s14   ;;  %s28_s16 = sadd.s32 1, %s475_s13  ;;  %s479_s14 = sphi %s508_s14, %s16_s14   ;;  %s475_s13 = sphi %s506_s13, %s658_s13   ;;  %s471_s12 = sphi %s504_s12, %s657_s12   ;;  %s467_s11 = sphi %s502_s11, %s656_s11   ;;  %s463_s10 = sphi %s500_s10, %s655_s10   ;;  %s459_s9 = sphi %s498_s9, %s654_s9  }
   0x5   : > { %p30_p0 = scmp.ge.s32.totalorder %s28_s16, 2  ;;  %s37_s17 = sadd.s32 1, %s467_s11 }
   0x6   : > { %p44_p1 = scmp.ne.s32.totalorder %s467_s11, %s463_s10  ;;  %p45_p2 = scmp.eq.s32.totalorder %s479_s14, 0 }
   0x7   : > { %s660_s16 = smov (%p30_p0, %s28_s16), 0  ;;  %p50_p4 = scmp.ne.s32.totalorder %s463_s10, %s459_s9 }
   0x8   : > { %p534_p3 = por %p45_p2, %p44_p1  ;;  %s32_s19 = ssub.s32 %s475_s13, %s660_s16 }
   0x9   : > { %p51_p5 = scmp.eq.s32.totalorder %s329_s15, 0  ;;  %p35_p6 = scmp.eq.s32.totalorder %s32_s19, 0 }
   0xa   : > { %p347_p8 = scmp.lt.s32.totalorder %s479_s14, 2  ;;  %s126_s22 = sand.u32 1, %s467_s11  }
   0xb   : > { %p541_p7 = por %p51_p5, %p50_p4  ;;  %s340_s23 = sshll.u32 %s475_s13, 8 }
   0xc   : > { %s547_s21 = scalar_select %p35_p6, %s467_s11, %s37_s17  }
   0xd   : > { %s333_s24 = sshll.u32 %s126_s22, 4  ;;  %s554_s27 = scalar_lea.hbm %s646_s0, %s340_s23 }
   0xe   : > { %s130_s28 = scalar_lea.vmem [#allocation2], %s333_s24  ;;  %p558_p9 = pnand %p347_p8, %p534_p3 }
   0xf   : > { %s140_s29 = sshll.u32 %s130_s28, 4  ;;  %s127_s3 = scalar_lea.sflag [#allocation3], %s126_s22  ;;  %s562_s29 = int_to_ptr.vmem [resolvable:$true] %s140_s29 }
  0x10   : > { %s399_s4 = scalar_lea.hbm %s554_s27, 256  ;;  %p401_p13 = pneg %p558_p9 }
  0x11   : > { %p400_p12 = scmp.ne.s32.totalorder %s554_s27, %s399_s4  ;;  %s404_s7 = scalar_lea.hbm %s646_s0, 512 }
  0x12   : > { %p405_p2 = scmp.lt.u32.totalorder %s554_s27, %s646_s0  ;;  %p406_p3 = scmp.lt.u32.totalorder %s404_s7, %s399_s4 }
  0x13   : > { %p402_p0 = pnand %p401_p13, %p400_p12  ;;  %p408_p5 = scmp.lt.u32.totalorder %s399_s4, %s554_s27 }
  0x14   : > { %p407_p4 = por %p406_p3, %p405_p2 }
  0x15   : > { %p403_p1 = pneg %p402_p0 }
  0x16   : > { %p409_p6 = por %p408_p5, %p407_p4 }
  0x18   : > { %p410_p8 = pnand %p409_p6, %p403_p1 }
  0x1a   : > { %413 = shalt.err (!%p410_p8)
}
  0x1b   : > { %s414_s15 = scalar_lea.vmem %s562_s29, 256  ;;  %s481_s17 = smov [#allocation2]  }
  0x1c   : > { %p415_p12 = scmp.ne.s32.totalorder %s562_s29, %s414_s15  ;;  %s419_s18 = sshll.u32 %s481_s17, 4  ;;  %s420_s18 = int_to_ptr.vmem [resolvable:$false] %s419_s18 }
  0x1d   : > { %s421_s19 = scalar_lea.vmem %s420_s18, 512  ;;  %p422_p11 = scmp.lt.s32.totalorder %s562_s29, %s420_s18 }
  0x1e   : > { %p417_p0 = pnand %p415_p12, %p401_p13  ;;  %p423_p2 = scmp.lt.s32.totalorder %s421_s19, %s414_s15 }
  0x20   : > { %p418_p10 = pneg %p417_p0  ;;  %p424_p3 = por %p423_p2, %p422_p11 }
  0x22   : > { %p425_p4 = pnand %p424_p3, %p418_p10 }
  0x24   : > { %428 = shalt.err (!%p425_p4)
}
  0x25   : > { %346 = dma.hbm_to_vmem [thread:$0]  (!%p558_p9), %s554_s27, 256, %s562_s29, %s127_s3  }
  0x26   : > { %p652_p1 = scmp.lt.s32.totalorder %s479_s14, 3  ;;  %p653_p5 = scmp.ge.s32.totalorder %s479_s14, 1 }
  0x28   : > { %p146_p13 = pnand %p653_p5, %p652_p1 }
  0x29   : > { %s151_s22 = sand.u32 (!%p146_p13), 1, %s463_s10  }
  0x2a   : > { %149 = sbr.rel (%p146_p13) target bundleno = 241 (0xf1), region = 24  ;;  %s337_s23 = sshll.u32 (!%p146_p13), %s151_s22, 4 }
  0x2b   : > { %s152_s24 = scalar_lea.sflag (!%p146_p13), [#allocation3], %s151_s22  ;;  %s155_s25 = scalar_lea.vmem (!%p146_p13), [#allocation2], %s337_s23 }
  0x31   : > { %454 = dma.done.wait (%p541_p7), %s152_s24, 256  }
  0x32   : > { %456 = vsyncadd (%p541_p7), %s152_s24, 4294967040  ;;  %p178_p10 = scmp.lt.s32.totalorder %s471_s12, 1  ;;  %vm188_vm0 = vcmask 0   ;;  %v482_v0 = vmov 0.0   ;;  %v191_v1 = vld [vmem:[%s155_s25] sm:$0xff]  ;;  %v192_v2 = vld [vmem:[%s155_s25 + $0x8] sm:$0xff] }
  0x33   : > { %v193_v3 = vadd.f32 %v192_v2, %v191_v1  ;;  %v196_v4 = vmul.f32 %v191_v1, %v191_v1  ;;  %v197_v5 = vmul.f32 %v192_v2, %v192_v2 }
  0x34   : > { %s662_s12 = smov (!%p178_p10, %s471_s12), 1 }
  0x35   : > { %s605_s28 = scalar_lea.vmem %s647_s1, %s662_s12  ;;  %194 = vadd.xlane.f32.xlu0 %v193_v3  ;;  %v198_v6 = vadd.f32 %v197_v5, %v196_v4  ;;  %s612_s30 = scalar_lea.vmem %s648_s2, %s662_s12 }
  0x36   : > { %189 = vst.msk [vmem:[%s605_s28] sm:$0x1] %vm188_vm0, %v482_v0  ;;  %190 = vst.msk [vmem:[%s612_s30] sm:$0x1] %vm188_vm0, %v482_v0 }
  0x39   : > { %199 = vadd.xlane.f32.xlu0 %v198_v6 }
  0x3d   : > { %v201_v17 = vld [vmem:[%s605_s28] sm:$0x1] }
  0x3e   : > { %v211_v22 = vld [vmem:[%s612_s30] sm:$0x1] }
  0xc2   : > { %v195_v7 = vpop.xlane.xlu0 %194 }
  0xc3   : > { %v202_v8 = vrot.slane %v195_v7, 4 }
  0xc5   : > { %v203_v9 = vadd.f32 %v202_v8, %v195_v7 }
  0xc6   : > { %v200_v10 = vpop.xlane.xlu0 %199 }
  0xc7   : > { %v204_v11 = vrot.slane %v203_v9, 2  ;;  %v212_v12 = vrot.slane %v200_v10, 4 }
  0xc9   : > { %v205_v13 = vadd.f32 %v204_v11, %v203_v9  ;;  %v213_v14 = vadd.f32 %v212_v12, %v200_v10 }
  0xcb   : > { %v206_v15 = vrot.slane %v205_v13, 1  ;;  %v214_v16 = vrot.slane %v213_v14, 2 }
  0xcd   : > { %v207_v18 = vadd.f32 %v206_v15, %v205_v13  ;;  %v215_v19 = vadd.f32 %v214_v16, %v213_v14 }
  0xcf   : > { %v208_v20 = vadd.f32 %v207_v18, %v201_v17  ;;  %v216_v21 = vrot.slane %v215_v19, 1 }
  0xd1   : > { %210 = vst.msk [vmem:[%s605_s28] sm:$0x1] %vm188_vm0, %v208_v20  ;;  %v217_v23 = vadd.f32 %v216_v21, %v215_v19 }
  0xd3   : > { %v218_v24 = vadd.f32 %v217_v23, %v211_v22 }
  0xd5   : > { %219 = vst.msk [vmem:[%s612_s30] sm:$0x1] %vm188_vm0, %v218_v24 }
  0xd8   : > { %v223_v25 = vld [vmem:[%s605_s28] sm:$0x1] }
  0xd9   : > { %v224_v26 = vmul.f32 0.00048828125, %v223_v25 }
  0xdb   : > { %230 = vst.msk [vmem:[%s605_s28] sm:$0x1] %vm188_vm0, %v224_v26  ;;  %v227_v28 = vmul.f32 %v224_v26, %v224_v26 }
  0xdc   : > { %v225_v27 = vld [vmem:[%s612_s30] sm:$0x1] }
  0xdd   : > { %v226_v29 = vmul.f32 0.00048828125, %v225_v27 }
  0xdf   : > { %v228_v30 = vsub.f32 %v226_v29, %v227_v28 }
  0xe1   : > { %v229_v31 = vmax.f32 %v228_v30, 0.0 }
  0xe3   : > { %v231_v32 = vadd.f32 1e-05, %v229_v31 }
  0xe5   : > { %397 = vrsqrt.f32 %v231_v32 }
  0xef   : > { %v398_v33 = vpop.eup %397 }
  0xf0   : > { %233 = vst.msk [vmem:[%s612_s30] sm:$0x1] %vm188_vm0, %v398_v33 }
  0xf1 PF: > { %s16_s14 = sadd.s32 1, %s479_s14   ;;  %s654_s9 = smov %s463_s10 }
  0xf2   : > { %p13_p7 = scmp.ge.s32.totalorder %s16_s14, 4   ;;  %s655_s10 = smov %s467_s11 }
  0xf3   : > { %s656_s11 = smov %s547_s21  ;;  %s657_s12 = smov %s475_s13 }
  0xf4   : > { %s658_s13 = smov %s660_s16  ;;  %15 = sbr.rel (!%p13_p7) target bundleno = 4 (0x4), region = 84 }
  0xfb   :  { %263 = vsyncpa [#allocation3], 1 }
  0xfc   :  { %265 = vsyncpa [#allocation3 + $0x1], 1 }

</bundles_post_ra>
